<compile_context>
chip_gen: v7x
topology: tpu7x:2x2x1
jax: 0.10.0
libtpu: 0.0.40
codegen_flags: <defaults>
</compile_context>

<pallas_src>
import functools

import jax
import jax.numpy as jnp
from jax.experimental import pallas as pl
from jax.experimental.pallas import tpu as pltpu


def _round_up(x, m):
    return ((x + m - 1) // m) * m


def mlp_kernel(x_ref, w1_ref, b1_ref, w2_ref, b2_ref, o_ref, *, compute_dtype):
    # fc1 on the MXU (bf16 operands, f32 accumulation).
    x = x_ref[...].astype(compute_dtype)
    h = jnp.dot(x, w1_ref[...], preferred_element_type=jnp.float32)
    # Fused bias + ReLU in f32 on the VPU (single pass over the tile).
    h = jnp.maximum(h + b1_ref[...].astype(jnp.float32), 0.0)
    # fc2 on the MXU, f32 accumulation, then bias; store only valid classes.
    out = jnp.dot(h.astype(compute_dtype), w2_ref[...],
                  preferred_element_type=jnp.float32)
    out = out + b2_ref[...].astype(jnp.float32)
    o_ref[...] = out.astype(o_ref.dtype)


def prepare_params(w1, b1, w2, b2, compute_dtype=jnp.bfloat16):
    """One-time (out of the forward hot path) weight prep: cast to the MXU
    compute dtype. Weights are already stored [in, out] / [1, out]."""
    return tuple(p.astype(compute_dtype) for p in (w1, b1, w2, b2))


def music_classifier_forward(x, w1, b1, w2, b2, *, batch_tile=256,
                             no_grid_rows=128, out_dtype=None):
    """x: [B, input_size]; w1: [input_size, hidden]; b1: [1, hidden];
    w2: [hidden, num_classes]; b2: [1, num_classes] (pass the outputs of
    prepare_params). Returns [B, num_classes] (defaults to x.dtype)."""
    B, in_size = x.shape
    hidden = w1.shape[1]
    num_classes = w2.shape[1]
    compute_dtype = w1.dtype
    out_dtype = x.dtype if out_dtype is None else out_dtype

    kernel = functools.partial(mlp_kernel, compute_dtype=compute_dtype)

    weight_bytes = sum(int(p.size) * p.dtype.itemsize for p in (w1, b1, w2, b2))
    cost = pl.CostEstimate(
        flops=2 * B * (in_size * hidden + hidden * num_classes),
        transcendentals=0,
        bytes_accessed=int(x.size) * x.dtype.itemsize + weight_bytes
        + B * num_classes * jnp.dtype(out_dtype).itemsize,
    )

    if B <= no_grid_rows:
        # Single invocation, everything resident in VMEM, no grid.
        return pl.pallas_call(
            kernel,
            out_shape=jax.ShapeDtypeStruct((B, num_classes), out_dtype),
            in_specs=[pl.BlockSpec(memory_space=pltpu.MemorySpace.VMEM)] * 5,
            out_specs=pl.BlockSpec(memory_space=pltpu.MemorySpace.VMEM),
            cost_estimate=cost,
        )(x, w1, b1, w2, b2)

    # Batch-tiled path: tile <= batch_tile rows (bounded fc1 intermediate) and
    # <= ceil(B/2) rows so there are always >= 2 parallel steps for v7x.
    tb = min(batch_tile, max(8, _round_up(pl.cdiv(B, 2), 8)))
    grid = (pl.cdiv(B, tb),)  # ragged last block: OOB output writes are masked
    return pl.pallas_call(
        kernel,
        out_shape=jax.ShapeDtypeStruct((B, num_classes), out_dtype),
        grid_spec=pl.GridSpec(
            grid=grid,
            in_specs=[
                # Streamed activations: triple-buffered to hide per-step DMA.
                pl.BlockSpec((tb, in_size), lambda i: (i, 0),
                             pipeline_mode=pl.Buffered(3)),
                # Weights / biases stay resident across the whole grid.
                pl.BlockSpec((in_size, hidden), lambda i: (0, 0)),
                pl.BlockSpec((1, hidden), lambda i: (0, 0)),
                pl.BlockSpec((hidden, num_classes), lambda i: (0, 0)),
                pl.BlockSpec((1, num_classes), lambda i: (0, 0)),
            ],
            # Only the valid `num_classes` lanes are written: output DMA per
            # step is tiny now, so default double-buffering suffices here.
            out_specs=pl.BlockSpec((tb, num_classes), lambda i: (i, 0)),
        ),
        compiler_params=pltpu.CompilerParams(
            dimension_semantics=("parallel",)),
        cost_estimate=cost,
    )(x, w1, b1, w2, b2)


def init_params(key, input_size, hidden_size, num_classes, dtype=jnp.float32):
    """Deterministic synthetic init matching nn.Linear (stored as [in, out])."""
    k1, k2, k3, k4 = jax.random.split(key, 4)
    # PyTorch nn.Linear default init is U(-1/sqrt(fan_in), 1/sqrt(fan_in)).
    s1 = 1.0 / (input_size ** 0.5)
    s2 = 1.0 / (hidden_size ** 0.5)
    w1 = jax.random.uniform(k1, (input_size, hidden_size), dtype, -s1, s1)
    b1 = jax.random.uniform(k2, (1, hidden_size), dtype, -s1, s1)
    w2 = jax.random.uniform(k3, (hidden_size, num_classes), dtype, -s2, s2)
    b2 = jax.random.uniform(k4, (1, num_classes), dtype, -s2, s2)
    return w1, b1, w2, b2


def reference_forward(x, w1, b1, w2, b2):
    h = jnp.maximum(x @ w1 + b1, 0.0)
    return h @ w2 + b2


if __name__ == "__main__":
    key = jax.random.PRNGKey(0)
    kx, kp, kx2 = jax.random.split(key, 3)

    batch, input_size, hidden_size, num_classes = 8, 32, 64, 10
    x = jax.random.normal(kx, (batch, input_size), jnp.float32)
    w1, b1, w2, b2 = init_params(kp, input_size, hidden_size, num_classes)
    # One-time weight preparation (outside the per-call hot path).
    pw1, pb1, pw2, pb2 = prepare_params(w1, b1, w2, b2)

    # Small-batch path (no grid, fully VMEM-resident).
    out = music_classifier_forward(x, pw1, pb1, pw2, pb2)
    out = jax.block_until_ready(out)
    ref = reference_forward(x, w1, b1, w2, b2)
    assert out.shape == (batch, num_classes)
    assert out.dtype == x.dtype
    # bf16 operands with f32 accumulation -> loosened tolerance.
    assert jnp.allclose(out, ref, atol=4e-2, rtol=4e-2), \
        float(jnp.max(jnp.abs(out - ref)))

    # Large-batch path: batch tiled over a "parallel" grid, ragged last block
    # (520 is deliberately NOT a multiple of the 256-row batch tile).
    big_batch = 520
    x2 = jax.random.normal(kx2, (big_batch, input_size), jnp.float32)
    out2 = music_classifier_forward(x2, pw1, pb1, pw2, pb2)
    out2 = jax.block_until_ready(out2)
    ref2 = reference_forward(x2, w1, b1, w2, b2)
    assert out2.shape == (big_batch, num_classes)
    assert jnp.allclose(out2, ref2, atol=4e-2, rtol=4e-2), \
        float(jnp.max(jnp.abs(out2 - ref2)))

    print("KERNEL_OK")
</pallas_src>

<mosaic_0001>
module attributes {stable_mosaic.version = 11 : i64} {
  func.func @mlp_kernel(%arg0: memref<8x32xf32, #tpu.memory_space<vmem>>, %arg1: memref<32x64xbf16, #tpu.memory_space<vmem>>, %arg2: memref<1x64xbf16, #tpu.memory_space<vmem>>, %arg3: memref<64x10xbf16, #tpu.memory_space<vmem>>, %arg4: memref<1x10xbf16, #tpu.memory_space<vmem>>, %arg5: memref<8x10xf32, #tpu.memory_space<vmem>>) attributes {dimension_semantics = [], scalar_prefetch = 0 : i64, scratch_operands = 0 : i64, tpu.core_type = #tpu.core_type<tc>} {
    %c0 = arith.constant 0 : index
    %c0_0 = arith.constant 0 : index
    %0 = vector.load %arg0[%c0, %c0_0] : memref<8x32xf32, #tpu.memory_space<vmem>>, vector<8x32xf32>
    %1 = arith.truncf %0 : vector<8x32xf32> to vector<8x32xbf16>
    %c0_1 = arith.constant 0 : index
    %c0_2 = arith.constant 0 : index
    %2 = vector.load %arg1[%c0_1, %c0_2] : memref<32x64xbf16, #tpu.memory_space<vmem>>, vector<32x64xbf16>
    %cst = arith.constant dense<0.000000e+00> : vector<8x64xf32>
    %3 = tpu.matmul %1, %2, %cst {dimension_numbers = #tpu.dot_dimension_numbers<[1], [0], [0], [1], [0, 0, 1, 1], [], []>} : vector<8x32xbf16>, vector<32x64xbf16>, vector<8x64xf32> -> vector<8x64xf32>
    %c0_3 = arith.constant 0 : index
    %c0_4 = arith.constant 0 : index
    %4 = vector.load %arg2[%c0_3, %c0_4] : memref<1x64xbf16, #tpu.memory_space<vmem>>, vector<1x64xbf16>
    %5 = arith.extf %4 : vector<1x64xbf16> to vector<1x64xf32>
    %6 = vector.broadcast %5 : vector<1x64xf32> to vector<8x64xf32>
    %7 = arith.addf %3, %6 : vector<8x64xf32>
    %cst_5 = arith.constant 0.000000e+00 : f32
    %8 = vector.broadcast %cst_5 : f32 to vector<8x64xf32>
    %9 = arith.maximumf %7, %8 : vector<8x64xf32>
    %10 = arith.truncf %9 : vector<8x64xf32> to vector<8x64xbf16>
    %c0_6 = arith.constant 0 : index
    %c0_7 = arith.constant 0 : index
    %11 = vector.load %arg3[%c0_6, %c0_7] : memref<64x10xbf16, #tpu.memory_space<vmem>>, vector<64x10xbf16>
    %cst_8 = arith.constant dense<0.000000e+00> : vector<8x10xf32>
    %12 = tpu.matmul %10, %11, %cst_8 {dimension_numbers = #tpu.dot_dimension_numbers<[1], [0], [0], [1], [0, 0, 1, 1], [], []>} : vector<8x64xbf16>, vector<64x10xbf16>, vector<8x10xf32> -> vector<8x10xf32>
    %c0_9 = arith.constant 0 : index
    %c0_10 = arith.constant 0 : index
    %13 = vector.load %arg4[%c0_9, %c0_10] : memref<1x10xbf16, #tpu.memory_space<vmem>>, vector<1x10xbf16>
    %14 = arith.extf %13 : vector<1x10xbf16> to vector<1x10xf32>
    %15 = vector.broadcast %14 : vector<1x10xf32> to vector<8x10xf32>
    %16 = arith.addf %12, %15 : vector<8x10xf32>
    %c0_11 = arith.constant 0 : index
    %c0_12 = arith.constant 0 : index
    %17 = vector.load %arg5[%c0_11, %c0_12] : memref<8x10xf32, #tpu.memory_space<vmem>>, vector<8x10xf32>
    tpu.vector_store %arg5[%c0_11, %c0_12], %16 {strides = array<i32>} : memref<8x10xf32, #tpu.memory_space<vmem>>, vector<8x10xf32>,
    return
  }
}

</mosaic_0001>

<bundles_post_ra>
// kernel: tpu_custom_call.1
= control target key start
LH: loop header
LB: loop body
LE: loop exit
PB: predicated region body
PF: predicated region fallthrough
CT: control target
= control target key end

     0   :  { %v259_v1 = vmov 0.0   ;;  %vm260_vm0 = vmmov 0   ;;  %vm46_vm1 = vcmask 261120   ;;  %s331_s0 = inlined_call_operand.vmem [shape: f32[8,32], index: 0, kind: input, shape index: {}]   ;;  %s332_s1 = inlined_call_operand.vmem [shape: bf16[32,64], index: 1, kind: input, shape index: {}]   ;;  %s333_s2 = inlined_call_operand.vmem [shape: bf16[1,64], index: 2, kind: input, shape index: {}]   ;;  %s334_s3 = inlined_call_operand.vmem [shape: bf16[64,10], index: 3, kind: input, shape index: {}]   ;;  %s335_s4 = inlined_call_operand.vmem [shape: bf16[1,10], index: 4, kind: input, shape index: {}]   ;;  %s336_s5 = inlined_call_operand.hbm [shape: f32[8,10], index: 5, kind: output, shape index: {}]  }
   0x1   :  { %v229_v0 = vld [vmem:[%s332_s1] sm:$0xff]   ;;  %206 = vmatprep.subr.bf16.mxu0 %v259_v1  ;;  %v230_v2 = vld [vmem:[%s332_s1 + $0x8] sm:$0xff]   ;;  %214 = vmatprep.subr.bf16.mxu1 %v259_v1 }
   0x2   :  { %207 = vmatpush3.bf16.msra.mxu0 %v229_v0  ;;  %210 = vmatprep.mubr.msk.bf16.mxu0 %vm260_vm0, %v259_v1  ;;  %v22_v3 = vld [vmem:[%s331_s0] sm:$0xff]  ;;  %v232_v6 = vld [vmem:[%s334_s3 + $0x8] sm:$0xff]  }
   0x3   :  { %208 = vmatprep.subr.bf16.mxu0 %v259_v1  ;;  %v231_v4 = vld [vmem:[%s334_s3] sm:$0xff]   ;;  %222 = vmatprep.mubr.msk.bf16.mxu1 %vm260_vm0, %v259_v1  ;;  %v23_v5 = vpack.c.bf16 %v22_v3, %v22_v3 }
   0x4   :  { %215 = vmatpush3.bf16.msra.mxu1 %v231_v4 }
   0x5   :  { %216 = vmatprep.subr.bf16.mxu1 %v259_v1 }
   0x6   :  { %209 = vmatpush3.bf16.msra.mxu0 %v230_v2 }
   0x7   :  { %10 = vsyncpa [#allocation3], 0  ;;  %v233_v7 = vld [vmem:[%s334_s3 + $0x10] sm:$0xff]   ;;  %v234_v8 = vld [vmem:[%s334_s3 + $0x18] sm:$0xff]   ;;  %v30_v9 = vlaneseq  ;;  %vm130_vm2 = vcmask 523264   ;;  %s261_s8 = smov [#allocation2]  }
   0x8   :  { %217 = vmatpush3.bf16.msra.mxu1 %v232_v6  ;;  %v28_v11 = vld [vmem:[%s333_s2] sm:$0x1]  ;;  %s182_s2 = sshll.u32 %s261_s8, 4  ;;  %vm174_vm3 = vcmask 80896   ;;  %s183_s2 = int_to_ptr.vmem [resolvable:$true] %s182_s2 }
   0x9   :  { %211 = vmatmul.mubr.msk.bf16.vlgmr.msra.gmra.mrb[0].mxu0 %vm46_vm1, %v23_v5  ;;  %218 = vmatprep.subr.bf16.mxu1 %v259_v1  ;;  %v31_v10 = vshrl.u32 %v30_v9, 7  ;;  %v29_v12 = vunpack.c.l.bf16 %v28_v11  ;;  %v100_v22 = vld [vmem:[%s335_s4] sm:$0x1]  ;;  %s235_s9 = scalar_lea.vmem %s183_s2, 128  ;;  %p240_p1 = scmp.lt.s32.totalorder %s183_s2, %s183_s2 }
   0xa   :  { %v101_v23 = vunpack.c.l.bf16 %v100_v22  ;;  %p236_p0 = scmp.ne.s32.totalorder %s183_s2, %s235_s9  ;;  %p241_p2 = scmp.lt.s32.totalorder %s235_s9, %s235_s9 }
   0xb   :  { %v32_v13 = vsub.s32 0, %v31_v10 }
   0xc   :  { %219 = vmatpush3.bf16.msra.mxu1 %v233_v7  ;;  %p242_p3 = por %p241_p2, %p240_p1 }
   0xd   :  { %220 = vmatprep.subr.bf16.mxu1 %v259_v1  ;;  %v33_v14 = vrot.slane %v29_v12, %v32_v13  ;;  %v105_v24 = vrot.slane %v101_v23, %v32_v13 }
   0xe   :  { %p243_p4 = pnand %p242_p3, %p236_p0 }
  0x10   :  { %221 = vmatpush3.bf16.msra.mxu1 %v234_v8 }
  0xdc   :  { %v84_v15 = vpop.f32.mrb[0].mxu0 }
  0xdd   :  { %v85_v16 = vadd.f32 %v84_v15, %v33_v14  ;;  %v212_v17 = vpop.f32.mrb[1].mxu0 }
  0xde   :  { %v87_v18 = vpop.f32.mrb[2].mxu0 }
  0xdf   :  { %v90_v19 = vmax.f32 %v85_v16, 0.0  ;;  %v213_v20 = vpop.f32.mrb[3].mxu0 }
  0xe1   :  { %v91_v21 = vpack.c.bf16 %v90_v19, %v90_v19 }
  0xe3   :  { %223 = vmatmul.mubr.msk.bf16.vlgmr.msra.gmra.mrb[0].mxu1 %vm130_vm2, %v91_v21 }
 0x1b6   :  { %v168_v25 = vpop.f32.mrb[0].mxu1 }
 0x1b7   :  { %v169_v26 = vadd.f32 %v168_v25, %v105_v24  ;;  %v224_v27 = vpop.f32.mrb[1].mxu1 }
 0x1b8   :  { %v171_v28 = vpop.f32.mrb[2].mxu1 }
 0x1b9   :  { %v225_v29 = vpop.f32.mrb[3].mxu1  ;;  %175 = vst.msk [vmem:[#allocation2] sm:$0xff] %vm174_vm3, %v169_v26 }
 0x1ba   :  { %246 = shalt.err (!%p243_p4)
}
 0x1bb   :  { %s247_s11 = scalar_lea.hbm %s336_s5, 128 }
 0x1bc   :  { %p248_p5 = scmp.ne.s32.totalorder %s336_s5, %s247_s11  ;;  %p251_p6 = scmp.lt.u32.totalorder %s247_s11, %s336_s5 }
 0x1be   :  { %p253_p7 = pnand %p251_p6, %p248_p5 }
 0x1c0   :  { %256 = shalt.err (!%p253_p7)
}
 0x1c1   :  { %185 = dma.vmem_to_hbm [thread:$0]  %s183_s2, 128, %s336_s5, [#allocation3]  }
 0x1c2   :  { %257 = dma.done.wait [#allocation3], 128  }
 0x1c3   :  { %258 = vsyncadd [#allocation3], 4294967168 }
 0x1c4   :  { %189 = vsyncpa [#allocation3], 1 }

</bundles_post_ra>
